<compile_context>
chip_gen: v5e
topology: v5e:2x2
jax: 0.10.0
libtpu: 0.0.40
codegen_flags: <defaults>
</compile_context>

<pallas_src>
import jax
import jax.numpy as jnp
from jax.experimental import pallas as pl
from jax.experimental.pallas import tpu as pltpu

LANE = 128          # vreg lane width: feature dims padded to multiples of this
ROW_PACK = 16       # bf16 packs 16 rows / vreg: batch tiles are multiples of 16


def _round_up(n, m):
    return ((n + m - 1) // m) * m


# -----------------------------------------------------------------------------
# Kernel
# -----------------------------------------------------------------------------
def bpnet_kernel(x_ref, w1_ref, b1_ref, w2_ref, b2_ref, w3_ref, b3_ref, o_ref):
    # h1 = relu(x @ W1 + b1); h2 = relu(h1 @ W2 + b2); out = relu(h2 @ W3 + b3)
    # bf16 MXU inputs, f32 accumulation + f32 bias/ReLU epilogue; intermediates
    # recast to bf16 immediately after ReLU so any materialized live range is
    # half-width (v5e has a single vector-store slot).
    x = x_ref[...].astype(jnp.bfloat16)      # free VPU cast; x may arrive as f32

    h1 = jnp.dot(x, w1_ref[...], preferred_element_type=jnp.float32) + b1_ref[...]
    h1 = jnp.maximum(h1, 0.0).astype(jnp.bfloat16)
    # dropout(p=0.5) in eval mode -> identity
    # TODO(synk): training-mode dropout (pltpu.prng_seed + prng_random_bits mask).

    h2 = jnp.dot(h1, w2_ref[...], preferred_element_type=jnp.float32) + b2_ref[...]
    h2 = jnp.maximum(h2, 0.0).astype(jnp.bfloat16)
    # dropout(p=0.5) in eval mode -> identity

    h3 = jnp.dot(h2, w3_ref[...], preferred_element_type=jnp.float32) + b3_ref[...]
    o_ref[...] = jnp.maximum(h3, 0.0).astype(o_ref.dtype)


# -----------------------------------------------------------------------------
# Per-generation VMEM plan and batch-tile selection
# -----------------------------------------------------------------------------
def _vmem_plan():
    """(vmem_limit_bytes, tile_budget_bytes, multi_core) for this TPU.

    v5e/v6e have 128 MiB physical VMEM per TensorCore (scoped defaults 16/32
    MiB, so we raise the limit explicitly); v7x has only 64 MiB and two
    TensorCores per chip (so the grid wants >= 2 batch tiles there)."""
    try:
        kind = jax.devices()[0].device_kind.lower()
    except Exception:
        kind = ""
    if "v7" in kind or "7x" in kind:
        return 48 * 2**20, 40 * 2**20, True
    return 96 * 2**20, 80 * 2**20, False


def _choose_tile_b(B, din_p, l1_p, l2_p, dout_p, tile_budget, multi_core):
    """Largest multiple-of-16 batch tile whose footprint (single-buffered
    resident weights + double-buffered x/out tiles + f32 intermediates) fits
    the per-generation VMEM budget. Bigger tiles amortize the ~0.35us/step
    overhead; mem-bound kernels reach ~85% of HBM roofline near 512+ rows."""
    weight_bytes = 2 * (din_p * l1_p + l1_p * l2_p + l2_p * dout_p) \
                   + 4 * (l1_p + l2_p + dout_p)
    per_row = (2 * 2 * din_p                    # x tile (bf16, double-buffered)
               + 2 * 2 * dout_p                 # out tile (bf16, double-buffered)
               + 4 * (l1_p + l2_p + dout_p)     # f32 matmul accumulators
               + 2 * (l1_p + l2_p))             # bf16 recasts of h1/h2
    avail = tile_budget - weight_bytes
    if avail < ROW_PACK * per_row:
        # TODO(synk): stream W1/W2/W3 (2-D grid over batch x N-chunks, or
        # pltpu.emit_pipeline) when the weights alone overflow the VMEM budget.
        return ROW_PACK
    tile = min(1024, avail // per_row, _round_up(B, ROW_PACK))
    if multi_core and B >= 2 * ROW_PACK:
        # Keep >= 2 grid steps so dimension_semantics=("parallel",) can shard
        # the batch across both v7x TensorCores.
        tile = min(tile, _round_up((B + 1) // 2, ROW_PACK))
    return max(ROW_PACK, (int(tile) // ROW_PACK) * ROW_PACK)


# -----------------------------------------------------------------------------
# One-time parameter preparation (hoisted out of the forward call)
# -----------------------------------------------------------------------------
def prepare_params(params):
    """Pad feature dims to 128 lanes, cast weights to bf16 and biases to f32.

    Call once at init/load time and reuse across forward calls so inference
    does not re-read/re-write every weight in HBM on each call."""
    input_dim, level1 = params["W1"].shape
    level2 = params["W2"].shape[1]
    output_dim = params["W3"].shape[1]
    din_p, l1_p, l2_p, dout_p = (_round_up(d, LANE)
                                 for d in (input_dim, level1, level2, output_dim))

    def pad2(a, rows, cols):
        a = a.reshape((-1, a.shape[-1])) if a.ndim == 2 else a.reshape((1, -1))
        return jnp.pad(a, ((0, rows - a.shape[0]), (0, cols - a.shape[1])))

    return {
        "W1": pad2(params["W1"], din_p, l1_p).astype(jnp.bfloat16),
        "W2": pad2(params["W2"], l1_p, l2_p).astype(jnp.bfloat16),
        "W3": pad2(params["W3"], l2_p, dout_p).astype(jnp.bfloat16),
        "b1": pad2(params["b1"], 1, l1_p).astype(jnp.float32),
        "b2": pad2(params["b2"], 1, l2_p).astype(jnp.float32),
        "b3": pad2(params["b3"], 1, dout_p).astype(jnp.float32),
        "dims": (input_dim, level1, level2, output_dim),
    }


# -----------------------------------------------------------------------------
# Forward wrapper
# -----------------------------------------------------------------------------
def bpnet_forward(x, prep, *, tile_b=None):
    """x: (B, input_dim) float32/bfloat16. prep: output of prepare_params.

    tile_b=None auto-sizes the batch tile from the per-generation VMEM budget
    (512-1024 rows at realistic sizes on v5e/v6e, smaller on v7x's 64 MiB
    VMEM); explicit values are rounded up to a multiple of 16.
    Returns (B, output_dim) in bfloat16 (upcast in the caller if f32 is needed).
    """
    input_dim, level1, level2, output_dim = prep["dims"]
    B, xin = x.shape
    assert xin == input_dim, f"x feature dim {xin} != model input_dim {input_dim}"

    w1, w2, w3 = prep["W1"], prep["W2"], prep["W3"]
    b1, b2, b3 = prep["b1"], prep["b2"], prep["b3"]
    din_p, l1_p = w1.shape
    l2_p = w2.shape[1]
    dout_p = w3.shape[1]

    vmem_limit, tile_budget, multi_core = _vmem_plan()

    if tile_b is None:
        tile_b = _choose_tile_b(B, din_p, l1_p, l2_p, dout_p,
                                tile_budget, multi_core)
    tile_b = _round_up(max(ROW_PACK, int(tile_b)), ROW_PACK)

    b_p = _round_up(max(B, tile_b), tile_b)
    grid = (b_p // tile_b,)

    # Activation input: only pad (fusing the bf16 cast into the same pass) when
    # shapes require it; otherwise hand the raw f32 array straight to the
    # kernel and let the free in-kernel VPU cast handle bf16 conversion.
    if b_p != B or din_p != input_dim:
        x_p = jnp.pad(x, ((0, b_p - B), (0, din_p - input_dim))).astype(jnp.bfloat16)
    else:
        x_p = x

    flops = 2 * b_p * (din_p * l1_p + l1_p * l2_p + l2_p * dout_p)
    bytes_accessed = (int(x_p.size) * x_p.dtype.itemsize
                      + (w1.size + w2.size + w3.size) * 2
                      + (b1.size + b2.size + b3.size) * 4
                      + b_p * dout_p * 2)

    def make_call(single_buffer_weights):
        if single_buffer_weights:
            # Constant-index blocks never change across the grid: a single
            # buffer halves their VMEM footprint vs default double-buffering.
            resident = lambda a: pl.BlockSpec(a.shape, lambda i: (0, 0),
                                              pipeline_mode=pl.Buffered(1))
        else:
            resident = lambda a: pl.BlockSpec(a.shape, lambda i: (0, 0))
        return pl.pallas_call(
            bpnet_kernel,
            out_shape=jax.ShapeDtypeStruct((b_p, dout_p), jnp.bfloat16),
            grid=grid,
            in_specs=[
                pl.BlockSpec((tile_b, din_p), lambda i: (i, 0)),  # x: batch-tiled
                resident(w1), resident(b1),
                resident(w2), resident(b2),
                resident(w3), resident(b3),
            ],
            out_specs=pl.BlockSpec((tile_b, dout_p), lambda i: (i, 0)),
            compiler_params=pltpu.CompilerParams(
                dimension_semantics=("parallel",),   # shard batch tiles across TCs
                vmem_limit_bytes=vmem_limit,         # above the scoped default
            ),
            cost_estimate=pl.CostEstimate(
                flops=flops, transcendentals=0, bytes_accessed=bytes_accessed),
        )

    try:
        out_p = make_call(True)(x_p, w1, b1, w2, b2, w3, b3)
    except Exception:
        # pl.Buffered(1) not supported by this jax/backend combo: fall back to
        # default double-buffered resident weights (correctness unaffected).
        out_p = make_call(False)(x_p, w1, b1, w2, b2, w3, b3)

    # Drop batch padding and padded output lanes.
    return out_p[:B, :output_dim]


# -----------------------------------------------------------------------------
# Init + reference
# -----------------------------------------------------------------------------
def init_params(key, input_dim, output_dim, level1, level2):
    """Deterministic init mimicking nn.Linear (uniform +-1/sqrt(fan_in))."""
    ks = jax.random.split(key, 6)

    def linear(kw, kb, fan_in, fan_out):
        bound = 1.0 / jnp.sqrt(fan_in)
        W = jax.random.uniform(kw, (fan_in, fan_out), jnp.float32, -bound, bound)
        b = jax.random.uniform(kb, (1, fan_out), jnp.float32, -bound, bound)
        return W, b

    W1, b1 = linear(ks[0], ks[1], input_dim, level1)
    W2, b2 = linear(ks[2], ks[3], level1, level2)
    W3, b3 = linear(ks[4], ks[5], level2, output_dim)
    return {"W1": W1, "b1": b1, "W2": W2, "b2": b2, "W3": W3, "b3": b3}


def bpnet_reference(x, p):
    h1 = jnp.maximum(x @ p["W1"] + p["b1"], 0.0)
    h2 = jnp.maximum(h1 @ p["W2"] + p["b2"], 0.0)
    return jnp.maximum(h2 @ p["W3"] + p["b3"], 0.0)


if __name__ == "__main__":
    # Small shapes consistent with the module: BPNet(input_dim=32, output_dim=8,
    # level1=64, level2=32), batch=8. At these toy sizes the call is pure
    # launch/DMA overhead; the batch-tiled grid + VMEM sizing pay off at real
    # batch sizes.
    batch, input_dim, output_dim, level1, level2 = 8, 32, 8, 64, 32

    key = jax.random.PRNGKey(0)
    kx, kp = jax.random.split(key)
    x = jax.random.normal(kx, (batch, input_dim), jnp.float32)
    params = init_params(kp, input_dim, output_dim, level1, level2)
    prep = prepare_params(params)          # one-time pad/cast, reused every call

    out = bpnet_forward(x, prep)
    out = jax.block_until_ready(out)

    ref = bpnet_reference(x, params)
    assert out.shape == (batch, output_dim)
    assert out.dtype == jnp.bfloat16
    # bf16 MXU inputs + bf16 writeback -> ~1e-2 relative error vs f32 reference.
    assert jnp.allclose(out.astype(jnp.float32), ref, atol=5e-2, rtol=5e-2), \
        "mismatch vs reference"

    print("KERNEL_OK")
</pallas_src>

<mosaic_0001>
module attributes {stable_mosaic.version = 11 : i64} {
  func.func @bpnet_kernel(%arg0: i32, %arg1: memref<16x128xbf16, #tpu.memory_space<vmem>>, %arg2: memref<128x128xbf16, #tpu.memory_space<vmem>>, %arg3: memref<1x128xf32, #tpu.memory_space<vmem>>, %arg4: memref<128x128xbf16, #tpu.memory_space<vmem>>, %arg5: memref<1x128xf32, #tpu.memory_space<vmem>>, %arg6: memref<128x128xbf16, #tpu.memory_space<vmem>>, %arg7: memref<1x128xf32, #tpu.memory_space<vmem>>, %arg8: memref<16x128xbf16, #tpu.memory_space<vmem>>) attributes {dimension_semantics = [#tpu.dimension_semantics<parallel>], iteration_bounds = array<i64: 1>, scalar_prefetch = 0 : i64, scratch_operands = 0 : i64, tpu.core_type = #tpu.core_type<tc>, window_params = [{transform_indices = @transform_0, window_bounds = array<i64: 16, 128>}, {pipeline_mode = #tpu.pipeline_mode<synchronous>, transform_indices = @transform_1, window_bounds = array<i64: 128, 128>}, {pipeline_mode = #tpu.pipeline_mode<synchronous>, transform_indices = @transform_2, window_bounds = array<i64: 1, 128>}, {pipeline_mode = #tpu.pipeline_mode<synchronous>, transform_indices = @transform_3, window_bounds = array<i64: 128, 128>}, {pipeline_mode = #tpu.pipeline_mode<synchronous>, transform_indices = @transform_4, window_bounds = array<i64: 1, 128>}, {pipeline_mode = #tpu.pipeline_mode<synchronous>, transform_indices = @transform_5, window_bounds = array<i64: 128, 128>}, {pipeline_mode = #tpu.pipeline_mode<synchronous>, transform_indices = @transform_6, window_bounds = array<i64: 1, 128>}, {transform_indices = @transform_7, window_bounds = array<i64: 16, 128>}]} {
    %c0 = arith.constant 0 : index
    %c0_0 = arith.constant 0 : index
    %0 = vector.load %arg1[%c0, %c0_0] : memref<16x128xbf16, #tpu.memory_space<vmem>>, vector<16x128xbf16>
    %c0_1 = arith.constant 0 : index
    %c0_2 = arith.constant 0 : index
    %1 = vector.load %arg2[%c0_1, %c0_2] : memref<128x128xbf16, #tpu.memory_space<vmem>>, vector<128x128xbf16>
    %cst = arith.constant dense<0.000000e+00> : vector<16x128xf32>
    %2 = tpu.matmul %0, %1, %cst {dimension_numbers = #tpu.dot_dimension_numbers<[1], [0], [0], [1], [0, 0, 1, 1], [], []>} : vector<16x128xbf16>, vector<128x128xbf16>, vector<16x128xf32> -> vector<16x128xf32>
    %c0_3 = arith.constant 0 : index
    %c0_4 = arith.constant 0 : index
    %3 = vector.load %arg3[%c0_3, %c0_4] : memref<1x128xf32, #tpu.memory_space<vmem>>, vector<1x128xf32>
    %4 = vector.broadcast %3 : vector<1x128xf32> to vector<16x128xf32>
    %5 = arith.addf %2, %4 : vector<16x128xf32>
    %cst_5 = arith.constant 0.000000e+00 : f32
    %6 = vector.broadcast %cst_5 : f32 to vector<16x128xf32>
    %7 = arith.maximumf %5, %6 : vector<16x128xf32>
    %8 = arith.truncf %7 : vector<16x128xf32> to vector<16x128xbf16>
    %c0_6 = arith.constant 0 : index
    %c0_7 = arith.constant 0 : index
    %9 = vector.load %arg4[%c0_6, %c0_7] : memref<128x128xbf16, #tpu.memory_space<vmem>>, vector<128x128xbf16>
    %cst_8 = arith.constant dense<0.000000e+00> : vector<16x128xf32>
    %10 = tpu.matmul %8, %9, %cst_8 {dimension_numbers = #tpu.dot_dimension_numbers<[1], [0], [0], [1], [0, 0, 1, 1], [], []>} : vector<16x128xbf16>, vector<128x128xbf16>, vector<16x128xf32> -> vector<16x128xf32>
    %c0_9 = arith.constant 0 : index
    %c0_10 = arith.constant 0 : index
    %11 = vector.load %arg5[%c0_9, %c0_10] : memref<1x128xf32, #tpu.memory_space<vmem>>, vector<1x128xf32>
    %12 = vector.broadcast %11 : vector<1x128xf32> to vector<16x128xf32>
    %13 = arith.addf %10, %12 : vector<16x128xf32>
    %cst_11 = arith.constant 0.000000e+00 : f32
    %14 = vector.broadcast %cst_11 : f32 to vector<16x128xf32>
    %15 = arith.maximumf %13, %14 : vector<16x128xf32>
    %16 = arith.truncf %15 : vector<16x128xf32> to vector<16x128xbf16>
    %c0_12 = arith.constant 0 : index
    %c0_13 = arith.constant 0 : index
    %17 = vector.load %arg6[%c0_12, %c0_13] : memref<128x128xbf16, #tpu.memory_space<vmem>>, vector<128x128xbf16>
    %cst_14 = arith.constant dense<0.000000e+00> : vector<16x128xf32>
    %18 = tpu.matmul %16, %17, %cst_14 {dimension_numbers = #tpu.dot_dimension_numbers<[1], [0], [0], [1], [0, 0, 1, 1], [], []>} : vector<16x128xbf16>, vector<128x128xbf16>, vector<16x128xf32> -> vector<16x128xf32>
    %c0_15 = arith.constant 0 : index
    %c0_16 = arith.constant 0 : index
    %19 = vector.load %arg7[%c0_15, %c0_16] : memref<1x128xf32, #tpu.memory_space<vmem>>, vector<1x128xf32>
    %20 = vector.broadcast %19 : vector<1x128xf32> to vector<16x128xf32>
    %21 = arith.addf %18, %20 : vector<16x128xf32>
    %cst_17 = arith.constant 0.000000e+00 : f32
    %22 = vector.broadcast %cst_17 : f32 to vector<16x128xf32>
    %23 = arith.maximumf %21, %22 : vector<16x128xf32>
    %24 = arith.truncf %23 : vector<16x128xf32> to vector<16x128xbf16>
    %c0_18 = arith.constant 0 : index
    %c0_19 = arith.constant 0 : index
    %25 = vector.load %arg8[%c0_18, %c0_19] : memref<16x128xbf16, #tpu.memory_space<vmem>>, vector<16x128xbf16>
    tpu.vector_store %arg8[%c0_18, %c0_19], %24 {strides = array<i32>} : memref<16x128xbf16, #tpu.memory_space<vmem>>, vector<16x128xbf16>,
    return
  }
  func.func @transform_0(%arg0: i32) -> (i32, i32) {
    %c0_i32 = arith.constant 0 : i32
    %c0_i32_0 = arith.constant 0 : i32
    return %arg0, %c0_i32 : i32, i32
  }
  func.func @transform_1(%arg0: i32) -> (i32, i32) {
    %c0_i32 = arith.constant 0 : i32
    %c0_i32_0 = arith.constant 0 : i32
    %c0_i32_1 = arith.constant 0 : i32
    return %c0_i32, %c0_i32_0 : i32, i32
  }
  func.func @transform_2(%arg0: i32) -> (i32, i32) {
    %c0_i32 = arith.constant 0 : i32
    %c0_i32_0 = arith.constant 0 : i32
    %c0_i32_1 = arith.constant 0 : i32
    return %c0_i32, %c0_i32_0 : i32, i32
  }
  func.func @transform_3(%arg0: i32) -> (i32, i32) {
    %c0_i32 = arith.constant 0 : i32
    %c0_i32_0 = arith.constant 0 : i32
    %c0_i32_1 = arith.constant 0 : i32
    return %c0_i32, %c0_i32_0 : i32, i32
  }
  func.func @transform_4(%arg0: i32) -> (i32, i32) {
    %c0_i32 = arith.constant 0 : i32
    %c0_i32_0 = arith.constant 0 : i32
    %c0_i32_1 = arith.constant 0 : i32
    return %c0_i32, %c0_i32_0 : i32, i32
  }
  func.func @transform_5(%arg0: i32) -> (i32, i32) {
    %c0_i32 = arith.constant 0 : i32
    %c0_i32_0 = arith.constant 0 : i32
    %c0_i32_1 = arith.constant 0 : i32
    return %c0_i32, %c0_i32_0 : i32, i32
  }
  func.func @transform_6(%arg0: i32) -> (i32, i32) {
    %c0_i32 = arith.constant 0 : i32
    %c0_i32_0 = arith.constant 0 : i32
    %c0_i32_1 = arith.constant 0 : i32
    return %c0_i32, %c0_i32_0 : i32, i32
  }
  func.func @transform_7(%arg0: i32) -> (i32, i32) {
    %c0_i32 = arith.constant 0 : i32
    %c0_i32_0 = arith.constant 0 : i32
    return %arg0, %c0_i32 : i32, i32
  }
}

module attributes {stable_mosaic.version = 11 : i64} {
  func.func @bpnet_kernel(%arg0: i32, %arg1: memref<16x128xbf16, #tpu.memory_space<vmem>>, %arg2: memref<128x128xbf16, #tpu.memory_space<vmem>>, %arg3: memref<1x128xf32, #tpu.memory_space<vmem>>, %arg4: memref<128x128xbf16, #tpu.memory_space<vmem>>, %arg5: memref<1x128xf32, #tpu.memory_space<vmem>>, %arg6: memref<128x128xbf16, #tpu.memory_space<vmem>>, %arg7: memref<1x128xf32, #tpu.memory_space<vmem>>, %arg8: memref<16x128xbf16, #tpu.memory_space<vmem>>) attributes {dimension_semantics = [#tpu.dimension_semantics<parallel>], iteration_bounds = array<i64: 1>, scalar_prefetch = 0 : i64, scratch_operands = 0 : i64, tpu.core_type = #tpu.core_type<tc>, window_params = [{transform_indices = @transform_0, window_bounds = array<i64: 16, 128>}, {pipeline_mode = #tpu.pipeline_mode<synchronous>, transform_indices = @transform_1, window_bounds = array<i64: 128, 128>}, {pipeline_mode = #tpu.pipeline_mode<synchronous>, transform_indices = @transform_2, window_bounds = array<i64: 1, 128>}, {pipeline_mode = #tpu.pipeline_mode<synchronous>, transform_indices = @transform_3, window_bounds = array<i64: 128, 128>}, {pipeline_mode = #tpu.pipeline_mode<synchronous>, transform_indices = @transform_4, window_bounds = array<i64: 1, 128>}, {pipeline_mode = #tpu.pipeline_mode<synchronous>, transform_indices = @transform_5, window_bounds = array<i64: 128, 128>}, {pipeline_mode = #tpu.pipeline_mode<synchronous>, transform_indices = @transform_6, window_bounds = array<i64: 1, 128>}, {transform_indices = @transform_7, window_bounds = array<i64: 16, 128>}]} {
    %c0 = arith.constant 0 : index
    %c0_0 = arith.constant 0 : index
    %0 = vector.load %arg1[%c0, %c0_0] : memref<16x128xbf16, #tpu.memory_space<vmem>>, vector<16x128xbf16>
    %c0_1 = arith.constant 0 : index
    %c0_2 = arith.constant 0 : index
    %1 = vector.load %arg2[%c0_1, %c0_2] : memref<128x128xbf16, #tpu.memory_space<vmem>>, vector<128x128xbf16>
    %cst = arith.constant dense<0.000000e+00> : vector<16x128xf32>
    %2 = tpu.matmul %0, %1, %cst {dimension_numbers = #tpu.dot_dimension_numbers<[1], [0], [0], [1], [0, 0, 1, 1], [], []>} : vector<16x128xbf16>, vector<128x128xbf16>, vector<16x128xf32> -> vector<16x128xf32>
    %c0_3 = arith.constant 0 : index
    %c0_4 = arith.constant 0 : index
    %3 = vector.load %arg3[%c0_3, %c0_4] : memref<1x128xf32, #tpu.memory_space<vmem>>, vector<1x128xf32>
    %4 = vector.broadcast %3 : vector<1x128xf32> to vector<16x128xf32>
    %5 = arith.addf %2, %4 : vector<16x128xf32>
    %cst_5 = arith.constant 0.000000e+00 : f32
    %6 = vector.broadcast %cst_5 : f32 to vector<16x128xf32>
    %7 = arith.maximumf %5, %6 : vector<16x128xf32>
    %8 = arith.truncf %7 : vector<16x128xf32> to vector<16x128xbf16>
    %c0_6 = arith.constant 0 : index
    %c0_7 = arith.constant 0 : index
    %9 = vector.load %arg4[%c0_6, %c0_7] : memref<128x128xbf16, #tpu.memory_space<vmem>>, vector<128x128xbf16>
    %cst_8 = arith.constant dense<0.000000e+00> : vector<16x128xf32>
    %10 = tpu.matmul %8, %9, %cst_8 {dimension_numbers = #tpu.dot_dimension_numbers<[1], [0], [0], [1], [0, 0, 1, 1], [], []>} : vector<16x128xbf16>, vector<128x128xbf16>, vector<16x128xf32> -> vector<16x128xf32>
    %c0_9 = arith.constant 0 : index
    %c0_10 = arith.constant 0 : index
    %11 = vector.load %arg5[%c0_9, %c0_10] : memref<1x128xf32, #tpu.memory_space<vmem>>, vector<1x128xf32>
    %12 = vector.broadcast %11 : vector<1x128xf32> to vector<16x128xf32>
    %13 = arith.addf %10, %12 : vector<16x128xf32>
    %cst_11 = arith.constant 0.000000e+00 : f32
    %14 = vector.broadcast %cst_11 : f32 to vector<16x128xf32>
    %15 = arith.maximumf %13, %14 : vector<16x128xf32>
    %16 = arith.truncf %15 : vector<16x128xf32> to vector<16x128xbf16>
    %c0_12 = arith.constant 0 : index
    %c0_13 = arith.constant 0 : index
    %17 = vector.load %arg6[%c0_12, %c0_13] : memref<128x128xbf16, #tpu.memory_space<vmem>>, vector<128x128xbf16>
    %cst_14 = arith.constant dense<0.000000e+00> : vector<16x128xf32>
    %18 = tpu.matmul %16, %17, %cst_14 {dimension_numbers = #tpu.dot_dimension_numbers<[1], [0], [0], [1], [0, 0, 1, 1], [], []>} : vector<16x128xbf16>, vector<128x128xbf16>, vector<16x128xf32> -> vector<16x128xf32>
    %c0_15 = arith.constant 0 : index
    %c0_16 = arith.constant 0 : index
    %19 = vector.load %arg7[%c0_15, %c0_16] : memref<1x128xf32, #tpu.memory_space<vmem>>, vector<1x128xf32>
    %20 = vector.broadcast %19 : vector<1x128xf32> to vector<16x128xf32>
    %21 = arith.addf %18, %20 : vector<16x128xf32>
    %cst_17 = arith.constant 0.000000e+00 : f32
    %22 = vector.broadcast %cst_17 : f32 to vector<16x128xf32>
    %23 = arith.maximumf %21, %22 : vector<16x128xf32>
    %24 = arith.truncf %23 : vector<16x128xf32> to vector<16x128xbf16>
    %c0_18 = arith.constant 0 : index
    %c0_19 = arith.constant 0 : index
    %25 = vector.load %arg8[%c0_18, %c0_19] : memref<16x128xbf16, #tpu.memory_space<vmem>>, vector<16x128xbf16>
    tpu.vector_store %arg8[%c0_18, %c0_19], %24 {strides = array<i32>} : memref<16x128xbf16, #tpu.memory_space<vmem>>, vector<16x128xbf16>,
    return
  }
  func.func @transform_0(%arg0: i32) -> (i32, i32) {
    %c0_i32 = arith.constant 0 : i32
    %c0_i32_0 = arith.constant 0 : i32
    return %arg0, %c0_i32 : i32, i32
  }
  func.func @transform_1(%arg0: i32) -> (i32, i32) {
    %c0_i32 = arith.constant 0 : i32
    %c0_i32_0 = arith.constant 0 : i32
    %c0_i32_1 = arith.constant 0 : i32
    return %c0_i32, %c0_i32_0 : i32, i32
  }
  func.func @transform_2(%arg0: i32) -> (i32, i32) {
    %c0_i32 = arith.constant 0 : i32
    %c0_i32_0 = arith.constant 0 : i32
    %c0_i32_1 = arith.constant 0 : i32
    return %c0_i32, %c0_i32_0 : i32, i32
  }
  func.func @transform_3(%arg0: i32) -> (i32, i32) {
    %c0_i32 = arith.constant 0 : i32
    %c0_i32_0 = arith.constant 0 : i32
    %c0_i32_1 = arith.constant 0 : i32
    return %c0_i32, %c0_i32_0 : i32, i32
  }
  func.func @transform_4(%arg0: i32) -> (i32, i32) {
    %c0_i32 = arith.constant 0 : i32
    %c0_i32_0 = arith.constant 0 : i32
    %c0_i32_1 = arith.constant 0 : i32
    return %c0_i32, %c0_i32_0 : i32, i32
  }
  func.func @transform_5(%arg0: i32) -> (i32, i32) {
    %c0_i32 = arith.constant 0 : i32
    %c0_i32_0 = arith.constant 0 : i32
    %c0_i32_1 = arith.constant 0 : i32
    return %c0_i32, %c0_i32_0 : i32, i32
  }
  func.func @transform_6(%arg0: i32) -> (i32, i32) {
    %c0_i32 = arith.constant 0 : i32
    %c0_i32_0 = arith.constant 0 : i32
    %c0_i32_1 = arith.constant 0 : i32
    return %c0_i32, %c0_i32_0 : i32, i32
  }
  func.func @transform_7(%arg0: i32) -> (i32, i32) {
    %c0_i32 = arith.constant 0 : i32
    %c0_i32_0 = arith.constant 0 : i32
    return %arg0, %c0_i32 : i32, i32
  }
}

</mosaic_0001>

<bundles_post_ra>
// kernel: tpu_custom_call.1
= control target key start
LH: loop header
LB: loop body
LE: loop exit
PB: predicated region body
PF: predicated region fallthrough
CT: control target
= control target key end

     0   :  { %12 = vsyncpa [#allocation3], 0  ;;  %s731_s0 = inlined_call_operand.hbm [shape: bf16[16,128], index: 0, kind: input, shape index: {}]   ;;  %s732_s1 = inlined_call_operand.hbm [shape: bf16[128,128], index: 1, kind: input, shape index: {}]   ;;  %s733_s2 = inlined_call_operand.vmem [shape: f32[1,128], index: 2, kind: input, shape index: {}]   ;;  %s734_s3 = inlined_call_operand.hbm [shape: bf16[128,128], index: 3, kind: input, shape index: {}]   ;;  %s735_s4 = inlined_call_operand.vmem [shape: f32[1,128], index: 4, kind: input, shape index: {}]   ;;  %s736_s5 = inlined_call_operand.hbm [shape: bf16[128,128], index: 5, kind: input, shape index: {}]   ;;  %s737_s6 = inlined_call_operand.vmem [shape: f32[1,128], index: 6, kind: input, shape index: {}]   ;;  %s738_s7 = inlined_call_operand.hbm [shape: bf16[16,128], index: 7, kind: output, shape index: {}]  }
   0x1   :  { %13 = vsyncpa [#allocation6], 0 }
   0x2   :  { %14 = vsyncpa [#allocation9], 0 }
   0x3   :  { %15 = vsyncpa [#allocation4], 0  ;;  %s33_s26 = sshll.u32 %s732_s1, 4  ;;  %s645_s27 = smov [#allocation5]   ;;  %s34_s26 = int_to_ptr.hbm [resolvable:$true] %s33_s26 }
   0x4   :  { %s35_s28 = sshll.u32 %s645_s27, 4  ;;  %s20_s8 = sshll.u32 %s731_s0, 4  ;;  %s36_s28 = int_to_ptr.vmem [resolvable:$true] %s35_s28  ;;  %s21_s8 = int_to_ptr.hbm [resolvable:$true] %s20_s8 }
   0x5   :  { %s646_s9 = smov 64   ;;  %s647_s10 = smov 4  }
   0x6   :  { %41 = dma.hbm_to_vmem [thread:$0]  %s34_s26, 1024, %s36_s28, [#allocation6], %s646_s9, %s646_s9, %s647_s10  }
   0x7   :  { %s648_s11 = smov [#allocation2]   ;;  %s48_s1 = sshll.u32 %s734_s3, 4  ;;  %s49_s1 = int_to_ptr.hbm [resolvable:$true] %s48_s1 }
   0x8   :  { %s22_s12 = sshll.u32 %s648_s11, 4  ;;  %s63_s16 = sshll.u32 %s736_s5, 4  ;;  %s23_s12 = int_to_ptr.vmem [resolvable:$true] %s22_s12  ;;  %s64_s16 = int_to_ptr.hbm [resolvable:$true] %s63_s16 }
   0x9   :  { %28 = dma.hbm_to_vmem [thread:$0]  %s21_s8, 128, %s23_s12, [#allocation3], %s646_s9, %s646_s9, %s647_s10  }
   0xa   :  { %s649_s17 = smov [#allocation7]   ;;  %s650_s19 = smov [#allocation8]  }
   0xb   :  { %s50_s18 = sshll.u32 %s649_s17, 4  ;;  %s65_s3 = sshll.u32 %s650_s19, 4  ;;  %s51_s18 = int_to_ptr.vmem [resolvable:$true] %s50_s18  ;;  %s66_s3 = int_to_ptr.vmem [resolvable:$true] %s65_s3 }
   0xc   :  { %56 = dma.hbm_to_vmem [thread:$0]  %s49_s1, 1024, %s51_s18, [#allocation6], %s646_s9, %s646_s9, %s647_s10  }
   0xd   :  { %71 = dma.hbm_to_vmem [thread:$0]  %s64_s16, 1024, %s66_s3, [#allocation9], %s646_s9, %s646_s9, %s647_s10  }
   0xe   :  { %637 = dma.done.wait [#allocation3], 128  }
   0xf   :  { %638 = vsyncadd [#allocation3], 4294967168 }
  0x10   :  { %639 = dma.done.wait [#allocation6], 2048  }
  0x11   :  { %640 = vsyncadd [#allocation6], 4294965248 }
  0x12   :  { %641 = dma.done.wait [#allocation9], 1024  }
  0x13   :  { %642 = vsyncadd [#allocation9], 4294966272  ;;  %v485_v0 = vld [vmem:[#allocation5 + $0x38] sm:$0xff]  ;;  %v484_v1 = vld [vmem:[#allocation5 + $0x30] sm:$0xff]  ;;  %s651_s24 = smov [#allocation10]  }
  0x14   :  { %166 = vmatpush.bf16.msra.mxu0 %v485_v0  ;;  %v493_v2 = vld [vmem:[#allocation7 + $0x38] sm:$0xff]  ;;  %v492_v3 = vld [vmem:[#allocation7 + $0x30] sm:$0xff]  ;;  %v483_v4 = vld [vmem:[#allocation5 + $0x28] sm:$0xff]  ;;  %s360_s25 = sshll.u32 %s651_s24, 4  ;;  %s361_s25 = int_to_ptr.vmem [resolvable:$true] %s360_s25 }
  0x15   :  { %251 = vmatpush.bf16.msra.mxu1 %v493_v2  ;;  %v491_v5 = vld [vmem:[#allocation7 + $0x28] sm:$0xff]  ;;  %v482_v6 = vld [vmem:[#allocation5 + $0x20] sm:$0xff]  ;;  %v481_v8 = vld [vmem:[#allocation5 + $0x18] sm:$0xff] }
  0x16   :  { %v490_v7 = vld [vmem:[#allocation7 + $0x20] sm:$0xff]  ;;  %v480_v9 = vld [vmem:[#allocation5 + $0x10] sm:$0xff]  ;;  %v479_v10 = vld [vmem:[#allocation5 + $0x8] sm:$0xff] }
  0x17   :  { %v478_v11 = vld [vmem:[#allocation5] sm:$0xff]  ;;  %v477_v12 = vld [vmem:[#allocation2] sm:$0xff]  ;;  %v488_v14 = vld [vmem:[#allocation7 + $0x10] sm:$0xff] }
  0x18   :  { %167 = vmatpush.bf16.msra.mxu0 %v484_v1  ;;  %v489_v13 = vld [vmem:[#allocation7 + $0x18] sm:$0xff]  ;;  %v487_v15 = vld [vmem:[#allocation7 + $0x8] sm:$0xff]  ;;  %v486_v16 = vld [vmem:[#allocation7] sm:$0xff] }
  0x19   :  { %252 = vmatpush.bf16.msra.mxu1 %v492_v3  ;;  %v501_v17 = vld [vmem:[#allocation8 + $0x38] sm:$0xff]  ;;  %v500_v18 = vld [vmem:[#allocation8 + $0x30] sm:$0xff]  ;;  %v499_v19 = vld [vmem:[#allocation8 + $0x28] sm:$0xff] }
  0x1a   :  { %336 = vmatpush.bf16.msra.mxu2 %v501_v17  ;;  %v498_v20 = vld [vmem:[#allocation8 + $0x20] sm:$0xff]  ;;  %v514_v22 = vld [vmem:[%s733_s2] ss:$0 sm:$0xff]  ;;  %v496_v30 = vld [vmem:[#allocation8 + $0x10] sm:$0xff] }
  0x1b   :  { %v497_v29 = vld [vmem:[#allocation8 + $0x18] sm:$0xff]  ;;  %v495_v31 = vld [vmem:[#allocation8 + $0x8] sm:$0xff]  ;;  %v494_v32 = vld [vmem:[#allocation8] sm:$0xff] }
  0x1c   :  { %168 = vmatpush.bf16.msra.mxu0 %v483_v4  ;;  %v515_v34 = vld [vmem:[%s735_s4] ss:$0 sm:$0xff]  ;;  %s362_s4 = sshll.u32 %s738_s7, 4  ;;  %s363_s4 = int_to_ptr.hbm [resolvable:$true] %s362_s4 }
  0x1d   :  { %253 = vmatpush.bf16.msra.mxu1 %v491_v5  ;;  %v516_v42 = vld [vmem:[%s737_s6] ss:$0 sm:$0xff] }
  0x1e   :  { %337 = vmatpush.bf16.msra.mxu2 %v500_v18 }
  0x20   :  { %169 = vmatpush.bf16.msra.mxu0 %v482_v6 }
  0x21   :  { %254 = vmatpush.bf16.msra.mxu1 %v490_v7 }
  0x22   :  { %338 = vmatpush.bf16.msra.mxu2 %v499_v19 }
  0x24   :  { %170 = vmatpush.bf16.msra.mxu0 %v481_v8 }
  0x25   :  { %255 = vmatpush.bf16.msra.mxu1 %v489_v13 }
  0x26   :  { %339 = vmatpush.bf16.msra.mxu2 %v498_v20 }
  0x28   :  { %171 = vmatpush.bf16.msra.mxu0 %v480_v9 }
  0x29   :  { %256 = vmatpush.bf16.msra.mxu1 %v488_v14 }
  0x2a   :  { %340 = vmatpush.bf16.msra.mxu2 %v497_v29 }
  0x2c   :  { %172 = vmatpush.bf16.msra.mxu0 %v479_v10 }
  0x2d   :  { %257 = vmatpush.bf16.msra.mxu1 %v487_v15 }
  0x2e   :  { %341 = vmatpush.bf16.msra.mxu2 %v496_v30 }
  0x30   :  { %173 = vmatpush.bf16.msra.mxu0 %v478_v11 }
  0x31   :  { %258 = vmatpush.bf16.msra.mxu1 %v486_v16 }
  0x32   :  { %342 = vmatpush.bf16.msra.mxu2 %v495_v31 }
  0x33   :  { %174 = vmatmul.bf16.vlgmr.msra.gmra.mxu0 %v477_v12 }
  0x36   :  { %343 = vmatpush.bf16.msra.mxu2 %v494_v32 }
  0xb0   :  { %v175_v21 = vpop.f32.mrf.mxu0 }
  0xb1   :  { %v176_v23 = vadd.f32 %v514_v22, %v175_v21 }
  0xb3   :  { %v180_v26 = vmax.f32 %v176_v23, 0.0 }
  0xb8   :  { %v177_v24 = vpop.f32.mrf.mxu0 }
  0xb9   :  { %v178_v25 = vadd.f32 %v514_v22, %v177_v24 }
  0xbb   :  { %v181_v27 = vmax.f32 %v178_v25, 0.0 }
  0xbd   :  { %v182_v28 = vpack.c.bf16 %v181_v27, %v180_v26 }
  0xbf   :  { %259 = vmatmul.bf16.vlgmr.msra.gmra.mxu1 %v182_v28 }
 0x13c   :  { %v260_v33 = vpop.f32.mrf.mxu1 }
 0x13d   :  { %v261_v35 = vadd.f32 %v515_v34, %v260_v33 }
 0x13f   :  { %v265_v38 = vmax.f32 %v261_v35, 0.0 }
 0x144   :  { %v262_v36 = vpop.f32.mrf.mxu1 }
 0x145   :  { %v263_v37 = vadd.f32 %v515_v34, %v262_v36 }
 0x147   :  { %v266_v39 = vmax.f32 %v263_v37, 0.0 }
 0x149   :  { %v267_v40 = vpack.c.bf16 %v266_v39, %v265_v38 }
 0x14b   :  { %344 = vmatmul.bf16.vlgmr.msra.gmra.mxu2 %v267_v40 }
 0x1ce   :  { %v345_v41 = vpop.f32.mrf.mxu2 }
 0x1cf   :  { %v346_v43 = vadd.f32 %v516_v42, %v345_v41 }
 0x1d1   :  { %v350_v46 = vmax.f32 %v346_v43, 0.0 }
 0x1d6   :  { %v347_v44 = vpop.f32.mrf.mxu2 }
 0x1d7   :  { %v348_v45 = vadd.f32 %v516_v42, %v347_v44 }
 0x1d9   :  { %v351_v47 = vmax.f32 %v348_v45, 0.0 }
 0x1db   :  { %v505_v48 = vpack.c.bf16 %v351_v47, %v350_v46 }
 0x1dd   :  { %506 = vst [vmem:[#allocation10] sm:$0xff] %v505_v48  }
 0x1de   :  { %368 = dma.vmem_to_hbm [thread:$0]  %s361_s25, 128, %s363_s4, [#allocation4], %s646_s9, %s646_s9, %s647_s10  }
 0x1df   :  { %643 = dma.done.wait [#allocation4], 128  }
 0x1e0   :  { %644 = vsyncadd [#allocation4], 4294967168 }
 0x1e1   :  { %373 = vsyncpa [#allocation3], 1 }
 0x1e2   :  { %374 = vsyncpa [#allocation6], 1 }
 0x1e3   :  { %375 = vsyncpa [#allocation9], 1 }
 0x1e4   :  { %376 = vsyncpa [#allocation4], 1 }

// kernel: tpu_custom_call.1
= control target key start
LH: loop header
LB: loop body
LE: loop exit
PB: predicated region body
PF: predicated region fallthrough
CT: control target
= control target key end

     0   :  { %12 = vsyncpa [#allocation3], 0  ;;  %s731_s0 = inlined_call_operand.hbm [shape: bf16[16,128], index: 0, kind: input, shape index: {}]   ;;  %s732_s1 = inlined_call_operand.hbm [shape: bf16[128,128], index: 1, kind: input, shape index: {}]   ;;  %s733_s2 = inlined_call_operand.vmem [shape: f32[1,128], index: 2, kind: input, shape index: {}]   ;;  %s734_s3 = inlined_call_operand.hbm [shape: bf16[128,128], index: 3, kind: input, shape index: {}]   ;;  %s735_s4 = inlined_call_operand.vmem [shape: f32[1,128], index: 4, kind: input, shape index: {}]   ;;  %s736_s5 = inlined_call_operand.hbm [shape: bf16[128,128], index: 5, kind: input, shape index: {}]   ;;  %s737_s6 = inlined_call_operand.vmem [shape: f32[1,128], index: 6, kind: input, shape index: {}]   ;;  %s738_s7 = inlined_call_operand.hbm [shape: bf16[16,128], index: 7, kind: output, shape index: {}]  }
   0x1   :  { %13 = vsyncpa [#allocation6], 0 }
   0x2   :  { %14 = vsyncpa [#allocation9], 0 }
   0x3   :  { %15 = vsyncpa [#allocation4], 0  ;;  %s33_s26 = sshll.u32 %s732_s1, 4  ;;  %s645_s27 = smov [#allocation5]   ;;  %s34_s26 = int_to_ptr.hbm [resolvable:$true] %s33_s26 }
   0x4   :  { %s35_s28 = sshll.u32 %s645_s27, 4  ;;  %s20_s8 = sshll.u32 %s731_s0, 4  ;;  %s36_s28 = int_to_ptr.vmem [resolvable:$true] %s35_s28  ;;  %s21_s8 = int_to_ptr.hbm [resolvable:$true] %s20_s8 }
   0x5   :  { %s646_s9 = smov 64   ;;  %s647_s10 = smov 4  }
   0x6   :  { %41 = dma.hbm_to_vmem [thread:$0]  %s34_s26, 1024, %s36_s28, [#allocation6], %s646_s9, %s646_s9, %s647_s10  }
   0x7   :  { %s648_s11 = smov [#allocation2]   ;;  %s48_s1 = sshll.u32 %s734_s3, 4  ;;  %s49_s1 = int_to_ptr.hbm [resolvable:$true] %s48_s1 }
   0x8   :  { %s22_s12 = sshll.u32 %s648_s11, 4  ;;  %s63_s16 = sshll.u32 %s736_s5, 4  ;;  %s23_s12 = int_to_ptr.vmem [resolvable:$true] %s22_s12  ;;  %s64_s16 = int_to_ptr.hbm [resolvable:$true] %s63_s16 }
   0x9   :  { %28 = dma.hbm_to_vmem [thread:$0]  %s21_s8, 128, %s23_s12, [#allocation3], %s646_s9, %s646_s9, %s647_s10  }
   0xa   :  { %s649_s17 = smov [#allocation7]   ;;  %s650_s19 = smov [#allocation8]  }
   0xb   :  { %s50_s18 = sshll.u32 %s649_s17, 4  ;;  %s65_s3 = sshll.u32 %s650_s19, 4  ;;  %s51_s18 = int_to_ptr.vmem [resolvable:$true] %s50_s18  ;;  %s66_s3 = int_to_ptr.vmem [resolvable:$true] %s65_s3 }
   0xc   :  { %56 = dma.hbm_to_vmem [thread:$0]  %s49_s1, 1024, %s51_s18, [#allocation6], %s646_s9, %s646_s9, %s647_s10  }
   0xd   :  { %71 = dma.hbm_to_vmem [thread:$0]  %s64_s16, 1024, %s66_s3, [#allocation9], %s646_s9, %s646_s9, %s647_s10  }
   0xe   :  { %637 = dma.done.wait [#allocation3], 128  }
   0xf   :  { %638 = vsyncadd [#allocation3], 4294967168 }
  0x10   :  { %639 = dma.done.wait [#allocation6], 2048  }
  0x11   :  { %640 = vsyncadd [#allocation6], 4294965248 }
  0x12   :  { %641 = dma.done.wait [#allocation9], 1024  }
  0x13   :  { %642 = vsyncadd [#allocation9], 4294966272  ;;  %v485_v0 = vld [vmem:[#allocation5 + $0x38] sm:$0xff]  ;;  %v484_v1 = vld [vmem:[#allocation5 + $0x30] sm:$0xff]  ;;  %s651_s24 = smov [#allocation10]  }
  0x14   :  { %166 = vmatpush.bf16.msra.mxu0 %v485_v0  ;;  %v493_v2 = vld [vmem:[#allocation7 + $0x38] sm:$0xff]  ;;  %v492_v3 = vld [vmem:[#allocation7 + $0x30] sm:$0xff]  ;;  %v483_v4 = vld [vmem:[#allocation5 + $0x28] sm:$0xff]  ;;  %s360_s25 = sshll.u32 %s651_s24, 4  ;;  %s361_s25 = int_to_ptr.vmem [resolvable:$true] %s360_s25 }
  0x15   :  { %251 = vmatpush.bf16.msra.mxu1 %v493_v2  ;;  %v491_v5 = vld [vmem:[#allocation7 + $0x28] sm:$0xff]  ;;  %v482_v6 = vld [vmem:[#allocation5 + $0x20] sm:$0xff]  ;;  %v481_v8 = vld [vmem:[#allocation5 + $0x18] sm:$0xff] }
  0x16   :  { %v490_v7 = vld [vmem:[#allocation7 + $0x20] sm:$0xff]  ;;  %v480_v9 = vld [vmem:[#allocation5 + $0x10] sm:$0xff]  ;;  %v479_v10 = vld [vmem:[#allocation5 + $0x8] sm:$0xff] }
  0x17   :  { %v478_v11 = vld [vmem:[#allocation5] sm:$0xff]  ;;  %v477_v12 = vld [vmem:[#allocation2] sm:$0xff]  ;;  %v488_v14 = vld [vmem:[#allocation7 + $0x10] sm:$0xff] }
  0x18   :  { %167 = vmatpush.bf16.msra.mxu0 %v484_v1  ;;  %v489_v13 = vld [vmem:[#allocation7 + $0x18] sm:$0xff]  ;;  %v487_v15 = vld [vmem:[#allocation7 + $0x8] sm:$0xff]  ;;  %v486_v16 = vld [vmem:[#allocation7] sm:$0xff] }
  0x19   :  { %252 = vmatpush.bf16.msra.mxu1 %v492_v3  ;;  %v501_v17 = vld [vmem:[#allocation8 + $0x38] sm:$0xff]  ;;  %v500_v18 = vld [vmem:[#allocation8 + $0x30] sm:$0xff]  ;;  %v499_v19 = vld [vmem:[#allocation8 + $0x28] sm:$0xff] }
  0x1a   :  { %336 = vmatpush.bf16.msra.mxu2 %v501_v17  ;;  %v498_v20 = vld [vmem:[#allocation8 + $0x20] sm:$0xff]  ;;  %v514_v22 = vld [vmem:[%s733_s2] ss:$0 sm:$0xff]  ;;  %v496_v30 = vld [vmem:[#allocation8 + $0x10] sm:$0xff] }
  0x1b   :  { %v497_v29 = vld [vmem:[#allocation8 + $0x18] sm:$0xff]  ;;  %v495_v31 = vld [vmem:[#allocation8 + $0x8] sm:$0xff]  ;;  %v494_v32 = vld [vmem:[#allocation8] sm:$0xff] }
  0x1c   :  { %168 = vmatpush.bf16.msra.mxu0 %v483_v4  ;;  %v515_v34 = vld [vmem:[%s735_s4] ss:$0 sm:$0xff]  ;;  %s362_s4 = sshll.u32 %s738_s7, 4  ;;  %s363_s4 = int_to_ptr.hbm [resolvable:$true] %s362_s4 }
  0x1d   :  { %253 = vmatpush.bf16.msra.mxu1 %v491_v5  ;;  %v516_v42 = vld [vmem:[%s737_s6] ss:$0 sm:$0xff] }
  0x1e   :  { %337 = vmatpush.bf16.msra.mxu2 %v500_v18 }
  0x20   :  { %169 = vmatpush.bf16.msra.mxu0 %v482_v6 }
  0x21   :  { %254 = vmatpush.bf16.msra.mxu1 %v490_v7 }
  0x22   :  { %338 = vmatpush.bf16.msra.mxu2 %v499_v19 }
  0x24   :  { %170 = vmatpush.bf16.msra.mxu0 %v481_v8 }
  0x25   :  { %255 = vmatpush.bf16.msra.mxu1 %v489_v13 }
  0x26   :  { %339 = vmatpush.bf16.msra.mxu2 %v498_v20 }
  0x28   :  { %171 = vmatpush.bf16.msra.mxu0 %v480_v9 }
  0x29   :  { %256 = vmatpush.bf16.msra.mxu1 %v488_v14 }
  0x2a   :  { %340 = vmatpush.bf16.msra.mxu2 %v497_v29 }
  0x2c   :  { %172 = vmatpush.bf16.msra.mxu0 %v479_v10 }
  0x2d   :  { %257 = vmatpush.bf16.msra.mxu1 %v487_v15 }
  0x2e   :  { %341 = vmatpush.bf16.msra.mxu2 %v496_v30 }
  0x30   :  { %173 = vmatpush.bf16.msra.mxu0 %v478_v11 }
  0x31   :  { %258 = vmatpush.bf16.msra.mxu1 %v486_v16 }
  0x32   :  { %342 = vmatpush.bf16.msra.mxu2 %v495_v31 }
  0x33   :  { %174 = vmatmul.bf16.vlgmr.msra.gmra.mxu0 %v477_v12 }
  0x36   :  { %343 = vmatpush.bf16.msra.mxu2 %v494_v32 }
  0xb0   :  { %v175_v21 = vpop.f32.mrf.mxu0 }
  0xb1   :  { %v176_v23 = vadd.f32 %v514_v22, %v175_v21 }
  0xb3   :  { %v180_v26 = vmax.f32 %v176_v23, 0.0 }
  0xb8   :  { %v177_v24 = vpop.f32.mrf.mxu0 }
  0xb9   :  { %v178_v25 = vadd.f32 %v514_v22, %v177_v24 }
  0xbb   :  { %v181_v27 = vmax.f32 %v178_v25, 0.0 }
  0xbd   :  { %v182_v28 = vpack.c.bf16 %v181_v27, %v180_v26 }
  0xbf   :  { %259 = vmatmul.bf16.vlgmr.msra.gmra.mxu1 %v182_v28 }
 0x13c   :  { %v260_v33 = vpop.f32.mrf.mxu1 }
 0x13d   :  { %v261_v35 = vadd.f32 %v515_v34, %v260_v33 }
 0x13f   :  { %v265_v38 = vmax.f32 %v261_v35, 0.0 }
 0x144   :  { %v262_v36 = vpop.f32.mrf.mxu1 }
 0x145   :  { %v263_v37 = vadd.f32 %v515_v34, %v262_v36 }
 0x147   :  { %v266_v39 = vmax.f32 %v263_v37, 0.0 }
 0x149   :  { %v267_v40 = vpack.c.bf16 %v266_v39, %v265_v38 }
 0x14b   :  { %344 = vmatmul.bf16.vlgmr.msra.gmra.mxu2 %v267_v40 }
 0x1ce   :  { %v345_v41 = vpop.f32.mrf.mxu2 }
 0x1cf   :  { %v346_v43 = vadd.f32 %v516_v42, %v345_v41 }
 0x1d1   :  { %v350_v46 = vmax.f32 %v346_v43, 0.0 }
 0x1d6   :  { %v347_v44 = vpop.f32.mrf.mxu2 }
 0x1d7   :  { %v348_v45 = vadd.f32 %v516_v42, %v347_v44 }
 0x1d9   :  { %v351_v47 = vmax.f32 %v348_v45, 0.0 }
 0x1db   :  { %v505_v48 = vpack.c.bf16 %v351_v47, %v350_v46 }
 0x1dd   :  { %506 = vst [vmem:[#allocation10] sm:$0xff] %v505_v48  }
 0x1de   :  { %368 = dma.vmem_to_hbm [thread:$0]  %s361_s25, 128, %s363_s4, [#allocation4], %s646_s9, %s646_s9, %s647_s10  }
 0x1df   :  { %643 = dma.done.wait [#allocation4], 128  }
 0x1e0   :  { %644 = vsyncadd [#allocation4], 4294967168 }
 0x1e1   :  { %373 = vsyncpa [#allocation3], 1 }
 0x1e2   :  { %374 = vsyncpa [#allocation6], 1 }
 0x1e3   :  { %375 = vsyncpa [#allocation9], 1 }
 0x1e4   :  { %376 = vsyncpa [#allocation4], 1 }

</bundles_post_ra>
